<compile_context>
chip_gen: v5e
topology: v5e:2x2
jax: 0.10.0
libtpu: 0.0.40
codegen_flags: <defaults>
</compile_context>

<pallas_src>
import numpy as np
import jax
import jax.numpy as jnp
from jax.experimental import pallas as pl
from jax.experimental.pallas import tpu as pltpu

_HIGHEST = jax.lax.Precision.HIGHEST


def _round_up(x, m):
    return (x + m - 1) // m * m


def _cdiv(a, b):
    return (a + b - 1) // b


def getrel_np(num_nodes):
    """Host mirror of getrel()/encode_onehot() — used ONLY by the numpy reference."""
    off_diag = np.ones((num_nodes, num_nodes), dtype=np.float32) - np.eye(
        num_nodes, dtype=np.float32
    )
    recv_idx, send_idx = np.nonzero(off_diag)  # edge e = (recv_idx[e], send_idx[e])
    eye = np.eye(num_nodes, dtype=np.float32)
    return eye[recv_idx], eye[send_idx]        # rel_rec, rel_send  [E, N]


def _make_kernel(N, Fn, G, Fe, TE, LANE, out_dtype):
    De = 2 * Fn + Fe
    inv_De = 1.0 / De
    inv_Fn = 1.0 / Fn

    def kernel(x_ref, gattr_ref, eattr_ref, out_ref):
        i = pl.program_id(0)
        x = x_ref[...]                                             # [N, Fn] native dtype

        # --- edge structure from int32 iota (no rel matrices in HBM) ----------
        # Edge e = (receiver r, sender s): r = e // (N-1), k = e % (N-1),
        # s = k + (k >= r).  Derived with int32 compares only (exact for any N,
        # no vector int div/mod).  Rows past E (ragged last tile) match no
        # column -> all-zero selectors; their output rows are masked by Pallas.
        rid = jax.lax.broadcasted_iota(jnp.int32, (TE, 1), 0) + i * TE        # [TE,1]
        col = jax.lax.broadcasted_iota(jnp.int32, (TE, N), 1)                 # [TE,N]
        recv_b = jnp.logical_and(col * (N - 1) <= rid,
                                 rid < (col + 1) * (N - 1))                   # col == e//(N-1)
        r = jnp.sum(jnp.where(recv_b, col, 0), axis=1, keepdims=True)         # [TE,1] int32
        k = rid - r * (N - 1)
        s = k + (k >= r).astype(jnp.int32)
        recv_oh = recv_b.astype(x.dtype)                                      # [TE,N]
        send_oh = (col == s).astype(x.dtype)                                  # [TE,N]

        # --- all2edges: row "gathers" of x (one-hot matmuls, HIGHEST precision
        # so they are exact row copies) + the global_attr @ edge_attr tile.
        senders = jnp.dot(send_oh, x, preferred_element_type=jnp.float32,
                          precision=_HIGHEST)                                 # [TE,Fn]
        receivers = jnp.dot(recv_oh, x, preferred_element_type=jnp.float32,
                            precision=_HIGHEST)                               # [TE,Fn]
        edges_g = jnp.dot(gattr_ref[...], eattr_ref[...],
                          preferred_element_type=jnp.float32,
                          precision=_HIGHEST)                                 # [TE,Fe]

        # --- all2globals (edge part): per-edge mean over De features computed
        # from per-piece lane sums (the concatenated edges are never re-read).
        ge = (jnp.sum(senders, axis=1, keepdims=True)
              + jnp.sum(receivers, axis=1, keepdims=True)
              + jnp.sum(edges_g, axis=1, keepdims=True)) * inv_De             # [TE,1]

        # --- lane-dense slab, direct slice stores (no concatenate) ------------
        out_ref[:, 0:Fn] = senders.astype(out_dtype)
        out_ref[:, Fn:2 * Fn] = receivers.astype(out_dtype)
        out_ref[:, 2 * Fn:De] = edges_g.astype(out_dtype)
        out_ref[:, De:De + 1] = ge.astype(out_dtype)

        # --- all2globals (node part): only tiles covering rows < N do any work.
        @pl.when(i * TE < N)
        def _():
            node_oh = (col == rid).astype(jnp.float32)                        # row id == node id
            xm = jnp.sum(x.astype(jnp.float32), axis=1, keepdims=True) * inv_Fn   # [N,1]
            gn = jnp.dot(node_oh, xm, preferred_element_type=jnp.float32,
                         precision=_HIGHEST)                                  # [TE,1]
            out_ref[:, De + 1:De + 2] = gn.astype(out_dtype)

        # Invariant: lanes [De+2, LANE) are never written (stale VMEM), and
        # lane De+1 is only valid for rows < N.  The wrapper must slice
        # accordingly.

    return kernel


def rgcn_conv3_forward(inputs, edge_attr, global_attr, *, te=None):
    """Pallas implementation of RGCNConv3.forward.

    Returns (output, edges, globals_) where `output` is what the PyTorch
    forward returns; `edges`/`globals_` are the intermediates it computes.
    """
    N, Fn = inputs.shape
    G, Fe = edge_attr.shape
    E = N * (N - 1)
    assert N >= 2, "need at least 2 nodes"
    assert global_attr.shape == (E, G), "global_attr must be [N*(N-1), G]"
    De = 2 * Fn + Fe
    LANE = _round_up(De + 2, 128)          # lane-dense output slab width
    out_dtype = jnp.result_type(inputs.dtype, edge_attr.dtype, global_attr.dtype)

    # E-tile: big tiles amortize the ~0.35us/step fixed cost, but keep the
    # per-step working set (out tile + ga tile double-buffered + [TE,N]
    # one-hot intermediates, f32 worst case) well inside v7x's 64 MiB VMEM.
    if te is None:
        te = 1024

        def _step_bytes(t):
            return 4 * (2 * t * (LANE + G) + 4 * t * max(N, 128))

        while te > 64 and _step_bytes(te) > (24 << 20):
            te //= 2
        # Keep >= 2 grid steps when there is enough work (v7x megacore).
        if te * 2 > E and E > 8:
            te = _cdiv(E, 2)
    te = max(8, _round_up(min(te, max(E, 8)), 8))
    num_tiles = _cdiv(E, te)

    # Explicit VMEM budget (v5e scoped default is only 16 MiB; v7x physical 64 MiB).
    tile_bytes = 4 * 2 * (N * Fn + te * G + G * Fe + te * LANE)     # double-buffered I/O tiles
    scratch_bytes = 4 * 8 * te * max(N, 128)                        # one-hots / selects / temps
    vmem_limit = int(1.25 * (tile_bytes + scratch_bytes)) + (8 << 20)
    vmem_limit = max(min(vmem_limit, 48 << 20), 16 << 20)

    kernel = _make_kernel(N, Fn, G, Fe, te, LANE, out_dtype)

    slab = pl.pallas_call(
        kernel,
        grid=(num_tiles,),
        in_specs=[
            pl.BlockSpec((N, Fn), lambda i: (0, 0)),     # x: resident every step
            pl.BlockSpec((te, G), lambda i: (i, 0)),     # global_attr: E-tiled (ragged last tile OK)
            pl.BlockSpec((G, Fe), lambda i: (0, 0)),     # edge_attr: resident
        ],
        out_specs=pl.BlockSpec((te, LANE), lambda i: (i, 0)),
        out_shape=jax.ShapeDtypeStruct((E, LANE), out_dtype),
        compiler_params=pltpu.CompilerParams(
            dimension_semantics=("parallel",),
            vmem_limit_bytes=vmem_limit,
        ),
    )(inputs, global_attr, edge_attr)

    edges = slab[:, :De]                                 # [E, De]
    g_e = slab[:, De:De + 1]                             # [E, 1]
    g_n = slab[:N, De + 1:De + 2]                        # [N, 1]
    globals_ = jnp.concatenate([g_e, g_n], axis=0)       # [E + N, 1]
    output = inputs                                      # all2nodes body: identity
    return output, edges, globals_


def _reference_numpy(inputs, edge_attr, global_attr):
    x = np.asarray(inputs, dtype=np.float32)
    ea = np.asarray(edge_attr, dtype=np.float32)
    ga = np.asarray(global_attr, dtype=np.float32)
    N = x.shape[0]
    rel_rec, rel_send = getrel_np(N)
    receivers = rel_rec @ x
    senders = rel_send @ x
    edges_n = np.concatenate([senders, receivers], axis=-1)
    edges_g = ga @ ea
    edges = np.concatenate([edges_n, edges_g], axis=-1)
    g_n = np.mean(x, axis=1, keepdims=True)
    g_e = np.mean(edges, axis=1, keepdims=True)
    globals_ = np.concatenate([g_e, g_n], axis=0)
    return x, edges, globals_


if __name__ == "__main__":
    # Small deterministic example consistent with the module:
    #   N = 8 nodes, in_channels = 16, num_globals (G) = 8, edge feature dim = 16
    N, Fn = 8, 16
    G, Fe = 8, 16
    E = N * (N - 1)  # 56 directed edges

    key = jax.random.PRNGKey(0)
    k1, k2, k3 = jax.random.split(key, 3)
    inputs = jax.random.normal(k1, (N, Fn), dtype=jnp.float32)
    edge_attr = jax.random.normal(k2, (G, Fe), dtype=jnp.float32)
    global_attr = jax.random.normal(k3, (E, G), dtype=jnp.float32)

    fwd = jax.jit(rgcn_conv3_forward, static_argnames=("te",))
    ref_out, ref_edges, ref_globals = _reference_numpy(inputs, edge_attr, global_attr)

    # te=None -> default tiling: 2 parallel tiles, ragged last tile, gn gated
    # off on tile 1.  te=8 -> 7 evenly-dividing tiles (longer pipelined grid).
    for te in (None, 8):
        output, edges, globals_ = fwd(inputs, edge_attr, global_attr, te=te)
        jax.block_until_ready((output, edges, globals_))
        assert np.allclose(np.asarray(output), ref_out, rtol=1e-3, atol=1e-3)
        assert np.allclose(np.asarray(edges), ref_edges, rtol=1e-3, atol=1e-3)
        assert np.allclose(np.asarray(globals_), ref_globals, rtol=1e-3, atol=1e-3)

    print("KERNEL_OK")
</pallas_src>

<mosaic_0001>
module attributes {stable_mosaic.version = 11 : i64} {
  func.func @kernel(%arg0: i32, %arg1: memref<8x16xf32, #tpu.memory_space<vmem>>, %arg2: memref<32x8xf32, #tpu.memory_space<vmem>>, %arg3: memref<8x16xf32, #tpu.memory_space<vmem>>, %arg4: memref<32x128xf32, #tpu.memory_space<vmem>>) attributes {dimension_semantics = [#tpu.dimension_semantics<parallel>], iteration_bounds = array<i64: 2>, scalar_prefetch = 0 : i64, scratch_operands = 0 : i64, tpu.core_type = #tpu.core_type<tc>, window_params = [{pipeline_mode = #tpu.pipeline_mode<synchronous>, transform_indices = @transform_0, window_bounds = array<i64: 8, 16>}, {transform_indices = @transform_1, window_bounds = array<i64: 32, 8>}, {pipeline_mode = #tpu.pipeline_mode<synchronous>, transform_indices = @transform_2, window_bounds = array<i64: 8, 16>}, {transform_indices = @transform_3, window_bounds = array<i64: 32, 128>}]} {
    %c0 = arith.constant 0 : index
    %c0_0 = arith.constant 0 : index
    %0 = vector.load %arg1[%c0, %c0_0] : memref<8x16xf32, #tpu.memory_space<vmem>>, vector<8x16xf32>
    %1 = tpu.iota {dimensions = array<i32: 0>} : vector<32x1xi32>
    %c32_i32 = arith.constant 32 : i32
    %2 = arith.muli %arg0, %c32_i32 : i32
    %3 = vector.broadcast %2 : i32 to vector<32x1xi32>
    %4 = arith.addi %1, %3 : vector<32x1xi32>
    %5 = tpu.iota {dimensions = array<i32: 1>} : vector<32x8xi32>
    %c7_i32 = arith.constant 7 : i32
    %6 = vector.broadcast %c7_i32 : i32 to vector<32x8xi32>
    %7 = arith.muli %5, %6 : vector<32x8xi32>
    %8 = vector.broadcast %4 : vector<32x1xi32> to vector<32x8xi32>
    %9 = arith.cmpi sle, %7, %8 : vector<32x8xi32>
    %c1_i32 = arith.constant 1 : i32
    %10 = vector.broadcast %c1_i32 : i32 to vector<32x8xi32>
    %11 = arith.addi %5, %10 : vector<32x8xi32>
    %c7_i32_1 = arith.constant 7 : i32
    %12 = vector.broadcast %c7_i32_1 : i32 to vector<32x8xi32>
    %13 = arith.muli %11, %12 : vector<32x8xi32>
    %14 = vector.broadcast %4 : vector<32x1xi32> to vector<32x8xi32>
    %15 = arith.cmpi slt, %14, %13 : vector<32x8xi32>
    %16 = arith.andi %9, %15 : vector<32x8xi1>
    %c0_i32 = arith.constant 0 : i32
    %17 = vector.broadcast %c0_i32 : i32 to vector<32x8xi32>
    %18 = arith.select %16, %5, %17 : vector<32x8xi1>, vector<32x8xi32>
    %cst = arith.constant dense<0> : vector<32xi32>
    %19 = vector.multi_reduction <add>, %18, %cst [1] : vector<32x8xi32> to vector<32xi32>
    %20 = vector.shape_cast %19 : vector<32xi32> to vector<32x1xi32>
    %c7_i32_2 = arith.constant 7 : i32
    %21 = vector.broadcast %c7_i32_2 : i32 to vector<32x1xi32>
    %22 = arith.muli %20, %21 : vector<32x1xi32>
    %23 = arith.subi %4, %22 : vector<32x1xi32>
    %24 = arith.cmpi sge, %23, %20 : vector<32x1xi32>
    %25 = arith.extui %24 : vector<32x1xi1> to vector<32x1xi32>
    %26 = arith.addi %23, %25 : vector<32x1xi32>
    %27 = arith.extui %16 : vector<32x8xi1> to vector<32x8xi32>
    %28 = arith.sitofp %27 : vector<32x8xi32> to vector<32x8xf32>
    %29 = vector.broadcast %26 : vector<32x1xi32> to vector<32x8xi32>
    %30 = arith.cmpi eq, %5, %29 : vector<32x8xi32>
    %31 = arith.extui %30 : vector<32x8xi1> to vector<32x8xi32>
    %32 = arith.sitofp %31 : vector<32x8xi32> to vector<32x8xf32>
    %cst_3 = arith.constant dense<0.000000e+00> : vector<32x16xf32>
    %33 = tpu.matmul %32, %0, %cst_3 {dimension_numbers = #tpu.dot_dimension_numbers<[1], [0], [0], [1], [0, 0, 1, 1], [], []>, precision = #tpu.contract_precision<fp32>} : vector<32x8xf32>, vector<8x16xf32>, vector<32x16xf32> -> vector<32x16xf32>
    %cst_4 = arith.constant dense<0.000000e+00> : vector<32x16xf32>
    %34 = tpu.matmul %28, %0, %cst_4 {dimension_numbers = #tpu.dot_dimension_numbers<[1], [0], [0], [1], [0, 0, 1, 1], [], []>, precision = #tpu.contract_precision<fp32>} : vector<32x8xf32>, vector<8x16xf32>, vector<32x16xf32> -> vector<32x16xf32>
    %c0_5 = arith.constant 0 : index
    %c0_6 = arith.constant 0 : index
    %35 = vector.load %arg2[%c0_5, %c0_6] : memref<32x8xf32, #tpu.memory_space<vmem>>, vector<32x8xf32>
    %c0_7 = arith.constant 0 : index
    %c0_8 = arith.constant 0 : index
    %36 = vector.load %arg3[%c0_7, %c0_8] : memref<8x16xf32, #tpu.memory_space<vmem>>, vector<8x16xf32>
    %cst_9 = arith.constant dense<0.000000e+00> : vector<32x16xf32>
    %37 = tpu.matmul %35, %36, %cst_9 {dimension_numbers = #tpu.dot_dimension_numbers<[1], [0], [0], [1], [0, 0, 1, 1], [], []>, precision = #tpu.contract_precision<fp32>} : vector<32x8xf32>, vector<8x16xf32>, vector<32x16xf32> -> vector<32x16xf32>
    %cst_10 = arith.constant dense<0.000000e+00> : vector<32xf32>
    %38 = vector.multi_reduction <add>, %33, %cst_10 [1] : vector<32x16xf32> to vector<32xf32>
    %39 = vector.shape_cast %38 : vector<32xf32> to vector<32x1xf32>
    %cst_11 = arith.constant dense<0.000000e+00> : vector<32xf32>
    %40 = vector.multi_reduction <add>, %34, %cst_11 [1] : vector<32x16xf32> to vector<32xf32>
    %41 = vector.shape_cast %40 : vector<32xf32> to vector<32x1xf32>
    %42 = arith.addf %39, %41 : vector<32x1xf32>
    %cst_12 = arith.constant dense<0.000000e+00> : vector<32xf32>
    %43 = vector.multi_reduction <add>, %37, %cst_12 [1] : vector<32x16xf32> to vector<32xf32>
    %44 = vector.shape_cast %43 : vector<32xf32> to vector<32x1xf32>
    %45 = arith.addf %42, %44 : vector<32x1xf32>
    %cst_13 = arith.constant 0.020833334 : f32
    %46 = vector.broadcast %cst_13 : f32 to vector<32x1xf32>
    %47 = arith.mulf %45, %46 : vector<32x1xf32>
    %c0_14 = arith.constant 0 : index
    %c0_15 = arith.constant 0 : index
    %48 = vector.load %arg4[%c0_14, %c0_15] : memref<32x128xf32, #tpu.memory_space<vmem>>, vector<32x16xf32>
    tpu.vector_store %arg4[%c0_14, %c0_15], %33 {strides = array<i32>} : memref<32x128xf32, #tpu.memory_space<vmem>>, vector<32x16xf32>,
    %c0_16 = arith.constant 0 : index
    %c16 = arith.constant 16 : index
    %49 = vector.load %arg4[%c0_16, %c16] : memref<32x128xf32, #tpu.memory_space<vmem>>, vector<32x16xf32>
    tpu.vector_store %arg4[%c0_16, %c16], %34 {strides = array<i32>} : memref<32x128xf32, #tpu.memory_space<vmem>>, vector<32x16xf32>,
    %c0_17 = arith.constant 0 : index
    %c32 = arith.constant 32 : index
    %50 = vector.load %arg4[%c0_17, %c32] : memref<32x128xf32, #tpu.memory_space<vmem>>, vector<32x16xf32>
    tpu.vector_store %arg4[%c0_17, %c32], %37 {strides = array<i32>} : memref<32x128xf32, #tpu.memory_space<vmem>>, vector<32x16xf32>,
    %c0_18 = arith.constant 0 : index
    %c48 = arith.constant 48 : index
    %51 = vector.load %arg4[%c0_18, %c48] : memref<32x128xf32, #tpu.memory_space<vmem>>, vector<32x1xf32>
    tpu.vector_store %arg4[%c0_18, %c48], %47 {strides = array<i32>} : memref<32x128xf32, #tpu.memory_space<vmem>>, vector<32x1xf32>,
    %c32_i32_19 = arith.constant 32 : i32
    %52 = arith.muli %arg0, %c32_i32_19 : i32
    %c8_i32 = arith.constant 8 : i32
    %53 = arith.cmpi slt, %52, %c8_i32 : i32
    %54 = arith.extui %53 : i1 to i32
    %c0_i32_20 = arith.constant 0 : i32
    %55 = arith.cmpi ne, %54, %c0_i32_20 : i32
    scf.if %55 {
      %56 = vector.broadcast %4 : vector<32x1xi32> to vector<32x8xi32>
      %57 = arith.cmpi eq, %5, %56 : vector<32x8xi32>
      %58 = arith.extui %57 : vector<32x8xi1> to vector<32x8xi32>
      %59 = arith.sitofp %58 : vector<32x8xi32> to vector<32x8xf32>
      %cst_21 = arith.constant dense<0.000000e+00> : vector<8xf32>
      %60 = vector.multi_reduction <add>, %0, %cst_21 [1] : vector<8x16xf32> to vector<8xf32>
      %61 = vector.shape_cast %60 : vector<8xf32> to vector<8x1xf32>
      %cst_22 = arith.constant 6.250000e-02 : f32
      %62 = vector.broadcast %cst_22 : f32 to vector<8x1xf32>
      %63 = arith.mulf %61, %62 : vector<8x1xf32>
      %cst_23 = arith.constant dense<0.000000e+00> : vector<32x1xf32>
      %64 = tpu.matmul %59, %63, %cst_23 {dimension_numbers = #tpu.dot_dimension_numbers<[1], [0], [0], [1], [0, 0, 1, 1], [], []>, precision = #tpu.contract_precision<fp32>} : vector<32x8xf32>, vector<8x1xf32>, vector<32x1xf32> -> vector<32x1xf32>
      %c0_24 = arith.constant 0 : index
      %c49 = arith.constant 49 : index
      %65 = vector.load %arg4[%c0_24, %c49] : memref<32x128xf32, #tpu.memory_space<vmem>>, vector<32x1xf32>
      tpu.vector_store %arg4[%c0_24, %c49], %64 {strides = array<i32>} : memref<32x128xf32, #tpu.memory_space<vmem>>, vector<32x1xf32>,
    } else {
    }
    return
  }
  func.func @transform_0(%arg0: i32) -> (i32, i32) {
    %c0_i32 = arith.constant 0 : i32
    %c0_i32_0 = arith.constant 0 : i32
    %c0_i32_1 = arith.constant 0 : i32
    return %c0_i32, %c0_i32_0 : i32, i32
  }
  func.func @transform_1(%arg0: i32) -> (i32, i32) {
    %c0_i32 = arith.constant 0 : i32
    %c0_i32_0 = arith.constant 0 : i32
    return %arg0, %c0_i32 : i32, i32
  }
  func.func @transform_2(%arg0: i32) -> (i32, i32) {
    %c0_i32 = arith.constant 0 : i32
    %c0_i32_0 = arith.constant 0 : i32
    %c0_i32_1 = arith.constant 0 : i32
    return %c0_i32, %c0_i32_0 : i32, i32
  }
  func.func @transform_3(%arg0: i32) -> (i32, i32) {
    %c0_i32 = arith.constant 0 : i32
    %c0_i32_0 = arith.constant 0 : i32
    return %arg0, %c0_i32 : i32, i32
  }
}

</mosaic_0001>

<bundles_post_ra>
// kernel: rgcn_conv3_forward.1
= control target key start
LH: loop header
LB: loop body
LE: loop exit
PB: predicated region body
PF: predicated region fallthrough
CT: control target
= control target key end

     0   :  { %s1985_s12 = smov 0   ;;  %s1987_s13 = smov 0   ;;  %s2347_s0 = inlined_call_operand.vmem [shape: f32[8,16], index: 0, kind: input, shape index: {}]   ;;  %s2348_s1 = inlined_call_operand.vmem [shape: f32[56,8], index: 1, kind: input, shape index: {}]   ;;  %s2349_s2 = inlined_call_operand.vmem [shape: f32[8,16], index: 2, kind: input, shape index: {}]   ;;  %s2350_s3 = inlined_call_operand.vmem [shape: f32[56,128], index: 3, kind: output, shape index: {}]  }
   0x1   :  { %s1989_s14 = smov 0  }
   0x2 LB: > { %s1998_s15 = sadd.s32 4294967295, %s1925_s14   ;;  %s2000_s16 = sadd.s32 1, %s1925_s14   ;;  %s1925_s14 = sphi %s1989_s14, %s2365_s14   ;;  %s1921_s13 = sphi %s1987_s13, %s2364_s13   ;;  %s1917_s12 = sphi %s1985_s12, %s2363_s12  }
   0x3   : > { %s85_s17 = ssub.s32 %s1925_s14, %s2000_s16  ;;  %s88_s18 = sadd.s32 1, %s1921_s13 }
   0x4   : > { %p86_p0 = scmp.eq.s32.totalorder %s85_s17, 0  ;;  %p98_p1 = scmp.ne.s32.totalorder %s1921_s13, %s1917_s12 }
   0x5   : > { %p99_p2 = scmp.eq.s32.totalorder %s1998_s15, 1  ;;  %p1699_p3 = scmp.ge.s32.totalorder %s1925_s14, 1 }
   0x6   : > { %s2008_s19 = scalar_select %p86_p0, %s1921_s13, %s88_s18  }
   0x7   : > { %p2010_p4 = por %p99_p2, %p98_p1  ;;  %p146_p5 = scmp.lt.s32.totalorder %s1925_s14, 3 }
   0x9   : > { %p147_p6 = pnand %p1699_p3, %p146_p5 }
   0xa   : > { %s2015_s21 = sshll.u32 (!%p147_p6), %s1998_s15, 5  ;;  %s2163_s24 = sshll.u32 (!%p147_p6), %s1998_s15, 2 }
   0xb   : > { %150 = sbr.rel (%p147_p6) target bundleno = 1118 (0x45e), region = 32  ;;  %p178_p7 = scmp.lt.s32.totalorder (!%p147_p6), %s2163_s24, 6 }
   0xc   : > { %s170_s5 = sand.u32 (!%p147_p6), 1, %s1917_s12   ;;  %s1961_s8 = smov (!%p147_p6), 16  }
   0xd   : > { %s1700_s6 = sshll.u32 (!%p147_p6), %s170_s5, 5  ;;  %s1962_s9 = smov (!%p147_p6), 32  }
   0xe   : > { %s2207_s7 = scalar_lea.vmem (!%p147_p6), [#allocation2], %s1700_s6   ;;  %p1736_p8 = scmp.ge.s32.totalorder (!%p147_p6), %s2015_s21, 8 }
  0x10   : > { %v193_v0 = vlaneseq  ;;  %v199_v3 = vstv %s2015_s21  ;;  %vm225_vm0 = vcmask 64512   ;;  %v2073_v42 = vld [vmem:[%s2347_s0] sm:$0xff]  ;;  %s179_s25 = scalar_select %p178_p7, %s2163_s24, 6 }
  0x11   : > { %v2076_v43 = vand.u32 4294901760, %v2073_v42  ;;  %s1964_s10 = smov (!%p1736_p8), 49  }
  0x12   : > { %v194_v1 = vshrl.u32 %v193_v0, 7  ;;  %v2017_v2 = vand.u32 127, %v193_v0  ;;  %s1702_s26 = sshll.u32 %s179_s25, 3 }
  0x13   : > { %v2080_v44 = vsub.f32 %v2073_v42, %v2076_v43  ;;  %1773 = vmatpush.msra.mxu2 %v2076_v43  ;;  %346 = vmatpush.msra.mxu0 %v2076_v43  ;;  %s2176_s29 = scalar_lea.vmem %s2348_s1, %s1702_s26 }
  0x14   : > { %v197_v4 = vadd.s32 24, %v194_v1  ;;  %v206_v5 = vmul.u32 7, %v2017_v2  ;;  %v211_v6 = vadd.s32 1, %v2017_v2  ;;  %v196_v7 = vadd.s32 16, %v194_v1 }
  0x15   : > { %v2022_v8 = vadd.s32 %v199_v3, %v194_v1  ;;  %v195_v9 = vadd.s32 8, %v194_v1  ;;  %v2085_v45 = vand.u32 4294901760, %v2080_v44  ;;  %435 = vmatpush.msrb.mxu2 %v2080_v44 }
  0x16   : > { %v2024_v10 = vadd.s32 %v199_v3, %v197_v4  ;;  %v212_v11 = vmul.u32 7, %v211_v6  ;;  %v2026_v12 = vadd.s32 %v199_v3, %v196_v7 }
  0x17   : > { %vm207_vm1 = vcmp.le.s32.totalorder %v206_v5, %v2022_v8  ;;  %v2038_v14 = vadd.s32 %v199_v3, %v195_v9  ;;  %v398_v46 = vsub.f32 %v2080_v44, %v2085_v45  ;;  %517 = vmatpush.msrb.mxu0 %v2085_v45  ;;  %v1959_v3 = vmov 0  }
  0x18   : > { %vm210_vm2 = vcmp.le.s32.totalorder %v206_v5, %v2024_v10  ;;  %vm216_vm3 = vcmp.lt.s32.totalorder %v2024_v10, %v212_v11  ;;  %vm209_vm4 = vcmp.le.s32.totalorder %v206_v5, %v2026_v12  ;;  %vm215_vm5 = vcmp.lt.s32.totalorder %v2026_v12, %v212_v11 }
  0x19   : > { %vm2033_vm6 = vmand %vm210_vm2, %vm216_vm3  ;;  %vm213_vm7 = vcmp.lt.s32.totalorder %v2022_v8, %v212_v11  ;;  %vm208_vm10 = vcmp.le.s32.totalorder %v206_v5, %v2038_v14  ;;  %vm214_vm11 = vcmp.lt.s32.totalorder %v2038_v14, %v212_v11  ;;  %v399_v47 = vand.u32 4294901760, %v398_v46 }
  0x1a   : > { %v224_v15 = vsel %vm2033_vm6, %v2017_v2, 0  ;;  %vm2043_vm8 = vmand %vm209_vm4, %vm215_vm5 }
  0x1b   : > { %v265_v17 = vsel %vm225_vm0, %v224_v15, 0  ;;  %v223_v18 = vsel %vm2043_vm8, %v2017_v2, 0  ;;  %vm2051_vm9 = vmand %vm207_vm1, %vm213_vm7  ;;  %1774 = vmatpush.msra.mxu3 %v399_v47  ;;  %400 = vmatpush.msra.mxu1 %v399_v47  ;;  %vm1145_vm7 = vcmask 261248  }
  0x1c   : > { %v267_v20 = vshrl.u32 %v265_v17, 16  ;;  %v252_v21 = vsel %vm225_vm0, %v223_v18, 0  ;;  %v266_v22 = vand.u32 65535, %v265_v17  ;;  %v221_v23 = vsel %vm2051_vm9, %v2017_v2, 0  ;;  %vm2062_vm12 = vmand %vm208_vm10, %vm214_vm11 }
  0x1d   : > { %v254_v24 = vshrl.u32 %v252_v21, 16  ;;  %v226_v25 = vsel %vm225_vm0, %v221_v23, 0  ;;  %v253_v32 = vand.u32 65535, %v252_v21  ;;  %v222_v33 = vsel %vm2062_vm12, %v2017_v2, 0  ;;  %473 = vmatpush.msrb.mxu3 %v2076_v43  ;;  %551 = vmatpush.msrb.mxu1 %v2076_v43 }
  0x1e   : > { %v269_v26 = vcvt.s32.f32 %v267_v20  ;;  %v268_v27 = vcvt.s32.f32 %v266_v22  ;;  %v228_v29 = vshrl.u32 %v226_v25, 16  ;;  %v227_v30 = vand.u32 65535, %v226_v25 }
  0x1f   : > { %v256_v28 = vcvt.s32.f32 %v254_v24  ;;  %v255_v36 = vcvt.s32.f32 %v253_v32  ;;  %v239_v37 = vsel %vm225_vm0, %v222_v33, 0 }
  0x20   : > { %272 = vadd.xlane.f32.xlu1 %v269_v26  ;;  %270 = vadd.xlane.f32.xlu2 %v268_v27  ;;  %v230_v34 = vcvt.s32.f32 %v228_v29  ;;  %v229_v35 = vcvt.s32.f32 %v227_v30  ;;  %v240_v38 = vand.u32 65535, %v239_v37  ;;  %v241_v39 = vshrl.u32 %v239_v37, 16 }
  0x21   : > { %259 = vadd.xlane.f32.xlu0 %v256_v28  ;;  %v1960_v28 = vmov 0.0  }
  0x22   : > { %v242_v40 = vcvt.s32.f32 %v240_v38  ;;  %v243_v41 = vcvt.s32.f32 %v241_v39  ;;  %v2149_v31 = vsel %vm2043_vm8, 1.0, %v1960_v28  ;;  %v2160_v16 = vsel %vm2033_vm6, 1.0, %v1960_v28 }
  0x23   : > { %vm1076_vm6 = vcmask 130048   ;;  %vm1166_vm8 = vcmask 392448  }
  0x28   : > { %233 = vadd.xlane.f32.xlu1 %v230_v34  ;;  %231 = vadd.xlane.f32.xlu2 %v229_v35 }
  0x29   : > { %257 = vadd.xlane.f32.xlu0 %v255_v36 }
  0x30   : > { %244 = vadd.xlane.f32.xlu1 %v242_v40 }
  0x31   : > { %246 = vadd.xlane.f32.xlu0 %v243_v41 }
  0x93   : > { %v273_v48 = vpop.xlane.xlu1 %272  ;;  %v271_v49 = vpop.xlane.xlu2 %270 }
  0x94   : > { %v275_v50 = vcvt.f32.s32 %v273_v48  ;;  %v260_v51 = vpop.xlane.xlu0 %259  ;;  %v274_v52 = vcvt.f32.s32 %v271_v49 }
  0x95   : > { %v262_v55 = vcvt.f32.s32 %v260_v51 }
  0x96   : > { %v276_v53 = vshll.u32 %v275_v50, 16 }
  0x97   : > { %v263_v63 = vshll.u32 %v262_v55, 16 }
  0x98   : > { %v277_v54 = vadd.s32 %v276_v53, %v274_v52 }
  0x9a   : > { %v281_v56 = vmul.u32 7, %v277_v54 }
  0x9b   : > { %v234_v57 = vpop.xlane.xlu1 %233  ;;  %v232_v58 = vpop.xlane.xlu2 %231 }
  0x9c   : > { %v285_v59 = vsub.s32 %v2024_v10, %v281_v56  ;;  %v236_v60 = vcvt.f32.s32 %v234_v57  ;;  %v258_v61 = vpop.xlane.xlu0 %257  ;;  %v235_v62 = vcvt.f32.s32 %v232_v58 }
  0x9d   : > { %v261_v0 = vcvt.f32.s32 %v258_v61 }
  0x9e   : > { %vm289_vm13 = vcmp.ge.s32.totalorder %v285_v59, %v277_v54  ;;  %v237_v1 = vshll.u32 %v236_v60, 16 }
  0x9f   : > { %v293_v4 = vsel %vm289_vm13, 1, %v1959_v3  ;;  %v264_v5 = vadd.s32 %v263_v63, %v261_v0 }
  0xa0   : > { %v238_v6 = vadd.s32 %v237_v1, %v235_v62  ;;  %v297_v9 = vadd.s32 %v293_v4, %v285_v59 }
  0xa1   : > { %v280_v7 = vmul.u32 7, %v264_v5 }
  0xa2   : > { %v278_v11 = vmul.u32 7, %v238_v6  ;;  %vm309_vm15 = vcmp.eq.s32.totalorder %v2017_v2, %v297_v9 }
  0xa3   : > { %v284_v15 = vsub.s32 %v2026_v12, %v280_v7  ;;  %v245_v17 = vpop.xlane.xlu1 %244  ;;  %v2098_v29 = vsel %vm309_vm15, 1.0, %v1960_v28 }
  0xa4   : > { %v282_v18 = vsub.s32 %v2022_v8, %v278_v11  ;;  %v247_v20 = vpop.xlane.xlu0 %246  ;;  %v248_v22 = vcvt.f32.s32 %v245_v17  ;;  %v328_v36 = vsel %vm225_vm0, %v2098_v29, 0  ;;  %v579_v17 = vsel %vm225_vm0, %v2160_v16, 0 }
  0xa5   : > { %vm288_vm14 = vcmp.ge.s32.totalorder %v284_v15, %v264_v5  ;;  %v249_v21 = vcvt.f32.s32 %v247_v20  ;;  %v372_v46 = vsub.f32 %v328_v36, %v328_v36  ;;  %v623_v20 = vsub.f32 %v579_v17, %v579_v17 }
  0xa6   : > { %v292_v23 = vsel %vm288_vm14, 1, %v1959_v3  ;;  %vm286_vm1 = vcmp.ge.s32.totalorder %v282_v18, %v238_v6  ;;  %v576_v6 = vsel %vm225_vm0, %v2149_v31, 0 }
  0xa7   : > { %v290_v24 = vsel %vm286_vm1, 1, %v1959_v3  ;;  %v250_v25 = vshll.u32 %v249_v21, 16  ;;  %v296_v26 = vadd.s32 %v292_v23, %v284_v15  ;;  %v373_v54 = vand.u32 4294901760, %v372_v46  ;;  %v820_v23 = vld [vmem:[%s2176_s29] sm:$0xff] }
  0xa8   : > { %v294_v27 = vadd.s32 %v290_v24, %v282_v18  ;;  %v615_v9 = vsub.f32 %v576_v6, %v576_v6  ;;  %v624_v21 = vand.u32 4294901760, %v623_v20 }
  0xa9   : > { %v251_v30 = vadd.s32 %v250_v25, %v248_v22  ;;  %vm308_vm2 = vcmp.eq.s32.totalorder %v2017_v2, %v296_v26  ;;  %v374_v57 = vsub.f32 %v372_v46, %v373_v54  ;;  %v826_v25 = vsel %vm225_vm0, %v820_v23, 0  ;;  %v824_v26 = vld [vmem:[%s2349_s2] sm:$0xff] }
  0xaa   : > { %v1710_v32 = vsel %vm308_vm2, 1.0, %v1960_v28  ;;  %vm306_vm3 = vcmp.eq.s32.totalorder %v2017_v2, %v294_v27  ;;  %v616_v15 = vand.u32 4294901760, %v615_v9  ;;  %v625_v22 = vsub.f32 %v623_v20, %v624_v21 }
  0xab   : > { %v279_v33 = vmul.u32 7, %v251_v30  ;;  %1714 = vmatmul.msk.f32.vlgmr.msra.gmra.mxu3 %vm225_vm0, %v1710_v32  ;;  %v1708_v34 = vsel %vm306_vm3, 1.0, %v1960_v28  ;;  %v325_v35 = vsel %vm225_vm0, %v1710_v32, 0  ;;  %v375_v60 = vand.u32 4294901760, %v374_v57 }
  0xac   : > { %1712 = vmatmul.msk.f32.vlgmr.msra.gmra.mxu1 %vm225_vm0, %v1708_v34  ;;  %v364_v37 = vsub.f32 %v325_v35, %v325_v35  ;;  %v319_v38 = vsel %vm225_vm0, %v1708_v34, 0  ;;  %651 = vmatpush.msra.mxu3 %v399_v47  ;;  %v617_v18 = vsub.f32 %v615_v9, %v616_v15  ;;  %v626_v24 = vand.u32 4294901760, %v625_v22  ;;  %v821_v35 = vld [vmem:[%s2176_s29 + $0x8] sm:$0xff] }
  0xad   : > { %v283_v39 = vsub.s32 %v2038_v14, %v279_v33  ;;  %v348_v40 = vsub.f32 %v319_v38, %v319_v38  ;;  %724 = vmatpush.msra.mxu1 %v2076_v43  ;;  %v854_v27 = vand.u32 4294901760, %v826_v25 }
  0xae   : > { %v365_v41 = vand.u32 4294901760, %v364_v37  ;;  %v618_v13 = vand.u32 4294901760, %v617_v18 }
  0xaf   : > { %vm287_vm4 = vcmp.ge.s32.totalorder %v283_v39, %v251_v30  ;;  %v349_v48 = vand.u32 4294901760, %v348_v40 }
  0xb0   : > { %v291_v49 = vsel %vm287_vm4, 1, %v1959_v3  ;;  %v366_v50 = vsub.f32 %v364_v37, %v365_v41 }
  0xb1   : > { %v295_v51 = vadd.s32 %v291_v49, %v283_v39  ;;  %v350_v52 = vsub.f32 %v348_v40, %v349_v48  ;;  %v822_v49 = vld [vmem:[%s2176_s29 + $0x10] sm:$0xff] }
  0xb2   : > { %v367_v53 = vand.u32 4294901760, %v366_v50  ;;  %v832_v50 = vsel %vm225_vm0, %v822_v49, 0 }
  0xb3   : > { %1715 = vmatmul.msk.f32.gmra.mxu3 %vm225_vm0, %v2098_v29  ;;  %vm307_vm5 = vcmp.eq.s32.totalorder %v2017_v2, %v295_v51  ;;  %v351_v47 = vand.u32 4294901760, %v350_v52  ;;  %v870_v51 = vand.u32 4294901760, %v832_v50 }
  0xb4   : > { %368 = vmatmul.f32.vlgmr.msra.gmra.mxu2 %v367_v53  ;;  %v1709_v55 = vsel %vm307_vm5, 1.0, %v1960_v28 }
  0xb5   : > { %1713 = vmatmul.msk.f32.gmra.mxu1 %vm225_vm0, %v1709_v55  ;;  %352 = vmatmul.f32.vlgmr.msra.gmra.mxu0 %v351_v47  ;;  %v322_v56 = vsel %vm225_vm0, %v1709_v55, 0  ;;  %v871_v53 = vsub.f32 %v832_v50, %v870_v51 }
  0xb6   : > { %v356_v58 = vsub.f32 %v322_v56, %v322_v56  ;;  %597 = vmatpush.msra.mxu2 %v2076_v43  ;;  %686 = vmatpush.msra.mxu0 %v2080_v44  ;;  %v2129_v44 = vsel %vm2051_vm9, 1.0, %v1960_v28  ;;  %vm1171_vm9 = vcmask 400768  }
  0xb8   : > { %v357_v59 = vand.u32 4294901760, %v356_v58 }
  0xba   : > { %v358_v61 = vsub.f32 %v356_v58, %v357_v59 }
  0xbb   : > { %477 = vmatmul.f32.vlgmr.msrb.gmra.mxu3 %v349_v48 }
  0xbc   : > { %376 = vmatmul.f32.gmra.mxu2 %v375_v60  ;;  %v359_v62 = vand.u32 4294901760, %v358_v61  ;;  %802 = vmatpush.msrb.mxu3 %v2076_v43  ;;  %v570_v43 = vsel %vm225_vm0, %v2129_v44, 0 }
  0xbd   : > { %1720 = vmatmul.msk.f32.vlgmr.msrb.gmra.mxu1 %vm225_vm0, %v1708_v34  ;;  %v599_v63 = vsub.f32 %v570_v43, %v570_v43 }
  0xbe   : > { %360 = vmatmul.f32.gmra.mxu0 %v359_v62 }
  0xbf   : > { %v600_v19 = vand.u32 4294901760, %v599_v63 }
  0xc1   : > { %v601_v1 = vsub.f32 %v599_v63, %v600_v19 }
  0xc3   : > { %483 = vmatmul.f32.gmra.mxu3 %v357_v59  ;;  %v602_v4 = vand.u32 4294901760, %v601_v1 }
  0xc4   : > { %438 = vmatmul.f32.vlgmr.msrb.gmra.mxu2 %v348_v40 }
  0xc5   : > { %1721 = vmatmul.msk.f32.gmra.mxu1 %vm225_vm0, %v1709_v55  ;;  %768 = vmatpush.msrb.mxu2 %v2085_v45  ;;  %v2139_v45 = vsel %vm2062_vm12, 1.0, %v1960_v28  ;;  %v852_v28 = vand.u32 4294901760, %v824_v26 }
  0xc6   : > { %1716 = vmatmul.msk.f32.vlgmr.msrb.gmra.mxu0 %vm225_vm0, %v1708_v34  ;;  %v573_v0 = vsel %vm225_vm0, %v2139_v45, 0 }
  0xc7   : > { %v607_v3 = vsub.f32 %v573_v0, %v573_v0  ;;  %853 = vmatpush.msrb.mxu0 %v852_v28  ;;  %v903_v30 = vsub.f32 %v824_v26, %v852_v28 }
  0xc9   : > { %v608_v5 = vand.u32 4294901760, %v607_v3  ;;  %v904_v33 = vand.u32 4294901760, %v903_v30 }
  0xcb   : > { %489 = vmatmul.f32.gmra.mxu3 %v365_v41  ;;  %v609_v7 = vsub.f32 %v607_v3, %v608_v5  ;;  %v905_v36 = vsub.f32 %v903_v30, %v904_v33 }
  0xcc   : > { %443 = vmatmul.f32.gmra.mxu2 %v356_v58 }
  0xcd   : > { %1722 = vmatmul.msk.f32.gmra.mxu1 %vm225_vm0, %v1710_v32  ;;  %v610_v11 = vand.u32 4294901760, %v609_v7  ;;  %v906_v39 = vand.u32 4294901760, %v905_v36 }
  0xce   : > { %1717 = vmatmul.msk.f32.gmra.mxu0 %vm225_vm0, %v1709_v55  ;;  %v823_v55 = vld [vmem:[%s2176_s29 + $0x18] sm:$0xff] }
  0xcf   : > { %907 = vmatpush.msrb.mxu1 %v906_v39  ;;  %v835_v56 = vsel %vm225_vm0, %v823_v55, 0 }
  0xd0   : > { %v878_v57 = vand.u32 4294901760, %v835_v56 }
  0xd2   : > { %v879_v59 = vsub.f32 %v835_v56, %v878_v57 }
  0xd3   : > { %495 = vmatmul.f32.gmra.mxu3 %v373_v54  ;;  %v872_v54 = vand.u32 4294901760, %v871_v53 }
  0xd4   : > { %448 = vmatmul.f32.gmra.mxu2 %v364_v37  ;;  %v829_v37 = vsel %vm225_vm0, %v821_v35, 0  ;;  %v880_v60 = vand.u32 4294901760, %v879_v59 }
  0xd5   : > { %1723 = vmatmul.msk.f32.gmra.mxu1 %vm225_vm0, %v2098_v29  ;;  %v862_v38 = vand.u32 4294901760, %v829_v37  ;;  %v873_v47 = vsub.f32 %v871_v53, %v872_v54 }
  0xd6   : > { %1718 = vmatmul.msk.f32.gmra.mxu0 %vm225_vm0, %v1710_v32  ;;  %v881_v61 = vsub.f32 %v879_v59, %v880_v60 }
  0xd7   : > { %v863_v41 = vsub.f32 %v829_v37, %v862_v38  ;;  %v874_v58 = vand.u32 4294901760, %v873_v47 }
  0xd8   : > { %v882_v62 = vand.u32 4294901760, %v881_v61 }
  0xdb   : > { %1724 = vmatmul.msk.f32.vlgmr.msra.gmra.mxu3 %vm225_vm0, %v2129_v44 }
  0xdc   : > { %453 = vmatmul.f32.gmra.mxu2 %v372_v46  ;;  %980 = vmatpush.msra.mxu3 %v852_v28  ;;  %v864_v46 = vand.u32 4294901760, %v863_v41 }
  0xdd   : > { %728 = vmatmul.f32.vlgmr.msra.gmra.mxu1 %v600_v19 }
  0xde   : > { %1719 = vmatmul.msk.f32.gmra.mxu0 %vm225_vm0, %v2098_v29  ;;  %v855_v29 = vsub.f32 %v826_v25, %v854_v27  ;;  %1058 = vmatpush.msra.mxu1 %v852_v28  ;;  %v865_v48 = vsub.f32 %v863_v41, %v864_v46 }
  0xe0   : > { %v856_v32 = vand.u32 4294901760, %v855_v29  ;;  %v866_v52 = vand.u32 4294901760, %v865_v48 }
  0xe2   : > { %v857_v34 = vsub.f32 %v855_v29, %v856_v32 }
  0xe3   : > { %1725 = vmatmul.msk.f32.gmra.mxu3 %vm225_vm0, %v2139_v45 }
  0xe4   : > { %603 = vmatmul.f32.vlgmr.msra.gmra.mxu2 %v602_v4  ;;  %v858_v40 = vand.u32 4294901760, %v857_v34 }
  0xe5   : > { %734 = vmatmul.f32.gmra.mxu1 %v608_v5  ;;  %942 = vmatpush.msra.mxu2 %v903_v30 }
  0xe6   : > { %689 = vmatmul.f32.vlgmr.msra.gmra.mxu0 %v599_v63 }
  0xe7   : > { %1024 = vmatpush.msra.mxu0 %v904_v33 }
  0xeb   : > { %1726 = vmatmul.msk.f32.gmra.mxu3 %vm225_vm0, %v2149_v31 }
  0xec   : > { %611 = vmatmul.f32.gmra.mxu2 %v610_v11 }
  0xed   : > { %740 = vmatmul.f32.gmra.mxu1 %v616_v15 }
  0xee   : > { %694 = vmatmul.f32.gmra.mxu0 %v607_v3 }
  0xf3   : > { %1727 = vmatmul.msk.f32.gmra.mxu3 %vm225_vm0, %v2160_v16 }
  0xf4   : > { %619 = vmatmul.f32.gmra.mxu2 %v618_v13 }
  0xf5   : > { %746 = vmatmul.f32.gmra.mxu1 %v624_v21 }
  0xf6   : > { %699 = vmatmul.f32.gmra.mxu0 %v615_v9 }
  0xfb   : > { %1732 = vmatmul.msk.f32.vlgmr.msrb.gmra.mxu3 %vm225_vm0, %v2129_v44 }
  0xfc   : > { %627 = vmatmul.f32.gmra.mxu2 %v626_v24 }
  0xfd   : > { %909 = vmatmul.f32.vlgmr.msrb.gmra.mxu1 %v854_v27 }
  0xfe   : > { %704 = vmatmul.f32.gmra.mxu0 %v623_v20 }
 0x103   : > { %1733 = vmatmul.msk.f32.gmra.mxu3 %vm225_vm0, %v2139_v45 }
 0x104   : > { %1728 = vmatmul.msk.f32.vlgmr.msrb.gmra.mxu2 %vm225_vm0, %v2129_v44 }
 0x105   : > { %913 = vmatmul.f32.gmra.mxu1 %v862_v38 }
 0x106   : > { %859 = vmatmul.f32.vlgmr.msrb.gmra.mxu0 %v858_v40 }
 0x10b   : > { %1734 = vmatmul.msk.f32.gmra.mxu3 %vm225_vm0, %v2149_v31 }
 0x10c   : > { %1729 = vmatmul.msk.f32.gmra.mxu2 %vm225_vm0, %v2139_v45 }
 0x10d   : > { %917 = vmatmul.f32.gmra.mxu1 %v870_v51 }
 0x10e   : > { %867 = vmatmul.f32.gmra.mxu0 %v866_v52 }
 0x113   : > { %1735 = vmatmul.msk.f32.gmra.mxu3 %vm225_vm0, %v2160_v16 }
 0x114   : > { %1730 = vmatmul.msk.f32.gmra.mxu2 %vm225_vm0, %v2149_v31 }
 0x115   : > { %921 = vmatmul.f32.gmra.mxu1 %v878_v57 }
 0x116   : > { %875 = vmatmul.f32.gmra.mxu0 %v874_v58 }
 0x11b   : > { %984 = vmatmul.f32.vlgmr.msra.gmra.mxu3 %v856_v32 }
 0x11c   : > { %1731 = vmatmul.msk.f32.gmra.mxu2 %vm225_vm0, %v2160_v16 }
 0x11d   : > { %1060 = vmatmul.f32.vlgmr.msra.gmra.mxu1 %v854_v27 }
 0x11e   : > { %883 = vmatmul.f32.gmra.mxu0 %v882_v62 }
 0x123   : > { %990 = vmatmul.f32.gmra.mxu3 %v864_v46 }
 0x124   : > { %945 = vmatmul.f32.vlgmr.msra.gmra.mxu2 %v855_v29 }
 0x125   : > { %1064 = vmatmul.f32.gmra.mxu1 %v862_v38 }
 0x126   : > { %1026 = vmatmul.f32.vlgmr.msra.gmra.mxu0 %v854_v27 }
 0x129   : > { %v403_v43 = vpop.f32.mrf.mxu1 }
 0x12b   : > { %996 = vmatmul.f32.gmra.mxu3 %v872_v54 }
 0x12c   : > { %950 = vmatmul.f32.gmra.mxu2 %v863_v41 }
 0x12d   : > { %1068 = vmatmul.f32.gmra.mxu1 %v870_v51 }
 0x12e   : > { %v411_v44 = vpop.f32.mrf.mxu3  ;;  %1030 = vmatmul.f32.gmra.mxu0 %v862_v38 }
 0x132   : > { %v353_v63 = vpop.f32.mrf.mxu0  ;;  %v407_v1 = vpop.f32.mrf.mxu1 }
 0x133   : > { %1002 = vmatmul.f32.gmra.mxu3 %v880_v60  ;;  %v404_v5 = vadd.f32 %v403_v43, %v353_v63 }
 0x134   : > { %955 = vmatmul.f32.gmra.mxu2 %v871_v53 }
 0x135   : > { %1072 = vmatmul.f32.gmra.mxu1 %v878_v57 }
 0x136   : > { %v415_v45 = vpop.f32.mrf.mxu3  ;;  %1034 = vmatmul.f32.gmra.mxu0 %v870_v51 }
 0x137   : > { %v369_v19 = vpop.f32.mrf.mxu2 }
 0x138   : > { %v412_v27 = vadd.f32 %v411_v44, %v369_v19 }
 0x13a   : > { %v554_v6 = vpop.f32.mrf.mxu1 }
 0x13b   : > { %v361_v0 = vpop.f32.mrf.mxu0 }
 0x13c   : > { %960 = vmatmul.f32.gmra.mxu2 %v879_v59  ;;  %v408_v18 = vadd.f32 %v407_v1, %v361_v0 }
 0x13e   : > { %v478_v3 = vpop.f32.mrf.mxu3  ;;  %1038 = vmatmul.f32.gmra.mxu0 %v878_v57 }
 0x13f   : > { %v377_v31 = vpop.f32.mrf.mxu2 }
 0x140   : > { %v416_v38 = vadd.f32 %v415_v45, %v377_v31 }
 0x142   : > { %v558_v22 = vpop.f32.mrf.mxu1 }
 0x143   : > { %v520_v4 = vpop.f32.mrf.mxu0 }
 0x146   : > { %v484_v7 = vpop.f32.mrf.mxu3 }
 0x147   : > { %v439_v9 = vpop.f32.mrf.mxu2 }
 0x148   : > { %v440_v16 = vadd.f32 %v439_v9, %v404_v5 }
 0x14a   : > { %v479_v11 = vadd.f32 %v478_v3, %v440_v16  ;;  %v562_v35 = vpop.f32.mrf.mxu1 }
 0x14b   : > { %v524_v15 = vpop.f32.mrf.mxu0 }
 0x14c   : > { %v521_v17 = vadd.f32 %v520_v4, %v479_v11 }
 0x14e   : > { %v490_v20 = vpop.f32.mrf.mxu3  ;;  %v555_v13 = vadd.f32 %v554_v6, %v521_v17 }
 0x14f   : > { %v444_v21 = vpop.f32.mrf.mxu2 }
 0x150   : > { %v445_v23 = vadd.f32 %v444_v21, %v408_v18  ;;  %v1077_v24 = vsel %vm1076_vm6, %v555_v13, 0.0  ;;  %1125 = vst.msk [vmem:[%s2207_s7] sm:$0xff] %vm1076_vm6, %v555_v13 }
 0x151   : > { %1078 = vadd.xlane.f32.xlu2 %v1077_v24 }
 0x152   : > { %v485_v25 = vadd.f32 %v484_v7, %v445_v23  ;;  %v566_v51 = vpop.f32.mrf.mxu1 }
 0x153   : > { %v528_v28 = vpop.f32.mrf.mxu0 }
 0x154   : > { %v525_v26 = vadd.f32 %v524_v15, %v485_v25 }
 0x156   : > { %v559_v29 = vadd.f32 %v558_v22, %v525_v26  ;;  %v496_v30 = vpop.f32.mrf.mxu3 }
 0x157   : > { %v449_v32 = vpop.f32.mrf.mxu2 }
 0x158   : > { %v450_v33 = vadd.f32 %v449_v32, %v412_v27  ;;  %v1080_v34 = vsel %vm1076_vm6, %v559_v29, 0.0  ;;  %1126 = vst.msk [vmem:[%s2207_s7 + $0x8] sm:$0xff] %vm1076_vm6, %v559_v29 }
 0x159   : > { %1081 = vadd.xlane.f32.xlu0 %v1080_v34 }
 0x15a   : > { %v491_v36 = vadd.f32 %v490_v20, %v450_v33  ;;  %v729_v57 = vpop.f32.mrf.mxu1 }
 0x15b   : > { %v532_v46 = vpop.f32.mrf.mxu0 }
 0x15c   : > { %v529_v37 = vadd.f32 %v528_v28, %v491_v36 }
 0x15e   : > { %v563_v39 = vadd.f32 %v562_v35, %v529_v37  ;;  %v654_v41 = vpop.f32.mrf.mxu3 }
 0x15f   : > { %v454_v40 = vpop.f32.mrf.mxu2 }
 0x160   : > { %v455_v48 = vadd.f32 %v454_v40, %v416_v38  ;;  %v1083_v49 = vsel %vm1076_vm6, %v563_v39, 0.0  ;;  %1127 = vst.msk [vmem:[%s2207_s7 + $0x10] sm:$0xff] %vm1076_vm6, %v563_v39 }
 0x161   : > { %1084 = vadd.xlane.f32.xlu1 %v1083_v49 }
 0x162   : > { %v497_v50 = vadd.f32 %v496_v30, %v455_v48  ;;  %v735_v61 = vpop.f32.mrf.mxu1 }
 0x163   : > { %v690_v47 = vpop.f32.mrf.mxu0 }
 0x164   : > { %v533_v52 = vadd.f32 %v532_v46, %v497_v50 }
 0x166   : > { %v567_v53 = vadd.f32 %v566_v51, %v533_v52  ;;  %v658_v56 = vpop.f32.mrf.mxu3 }
 0x167   : > { %v604_v54 = vpop.f32.mrf.mxu2 }
 0x168   : > { %v1086_v55 = vsel %vm1076_vm6, %v567_v53, 0.0  ;;  %1128 = vst.msk [vmem:[%s2207_s7 + $0x18] sm:$0xff] %vm1076_vm6, %v567_v53  ;;  %v655_v63 = vadd.f32 %v654_v41, %v604_v54 }
 0x169   : > { %1087 = vadd.xlane.f32.xlu2 %v1086_v55 }
 0x16a   : > { %v741_v19 = vpop.f32.mrf.mxu1  ;;  %v691_v0 = vadd.f32 %v690_v47, %v655_v63 }
 0x16b   : > { %v695_v59 = vpop.f32.mrf.mxu0 }
 0x16c   : > { %v730_v3 = vadd.f32 %v729_v57, %v691_v0 }
 0x16e   : > { %v662_v60 = vpop.f32.mrf.mxu3 }
 0x16f   : > { %v612_v58 = vpop.f32.mrf.mxu2 }
 0x170   : > { %v659_v31 = vadd.f32 %v658_v56, %v612_v58 }
 0x172   : > { %v696_v7 = vadd.f32 %v695_v59, %v659_v31  ;;  %v747_v9 = vpop.f32.mrf.mxu1 }
 0x173   : > { %v700_v44 = vpop.f32.mrf.mxu0 }
 0x174   : > { %v736_v15 = vadd.f32 %v735_v61, %v696_v7 }
 0x176   : > { %v666_v43 = vpop.f32.mrf.mxu3 }
 0x177   : > { %v620_v62 = vpop.f32.mrf.mxu2 }
 0x178   : > { %v663_v27 = vadd.f32 %v662_v60, %v620_v62 }
 0x17a   : > { %v910_v22 = vpop.f32.mrf.mxu1  ;;  %v701_v29 = vadd.f32 %v700_v44, %v663_v27 }
 0x17b   : > { %v705_v4 = vpop.f32.mrf.mxu0 }
 0x17c   : > { %v742_v32 = vadd.f32 %v741_v19, %v701_v29 }
 0x17e   : > { %v805_v1 = vpop.f32.mrf.mxu3 }
 0x17f   : > { %v628_v45 = vpop.f32.mrf.mxu2 }
 0x180   : > { %v667_v49 = vadd.f32 %v666_v43, %v628_v45 }
 0x182   : > { %v914_v26 = vpop.f32.mrf.mxu1  ;;  %v706_v52 = vadd.f32 %v705_v4, %v667_v49 }
 0x183   : > { %v860_v17 = vpop.f32.mrf.mxu0 }
 0x184   : > { %v748_v54 = vadd.f32 %v747_v9, %v706_v52  ;;  %v911_v57 = vadd.f32 %v910_v22, %v860_v17 }
 0x186   : > { %v809_v20 = vpop.f32.mrf.mxu3 }
 0x187   : > { %v771_v5 = vpop.f32.mrf.mxu2 }
 0x188   : > { %v772_v6 = vadd.f32 %v771_v5, %v730_v3 }
 0x18a   : > { %v806_v16 = vadd.f32 %v805_v1, %v772_v6  ;;  %v918_v34 = vpop.f32.mrf.mxu1 }
 0x18b   : > { %v868_v24 = vpop.f32.mrf.mxu0 }
 0x18c   : > { %1133 = vrot.lane.b32.xlu2 %v806_v16, %s1961_s8  ;;  %v1089_v11 = vsel %vm1076_vm6, %v806_v16, 0.0 }
 0x18d   : > { %1090 = vadd.xlane.f32.xlu0 %v1089_v11 }
 0x18e   : > { %v813_v28 = vpop.f32.mrf.mxu3 }
 0x18f   : > { %v775_v18 = vpop.f32.mrf.mxu2 }
 0x190   : > { %v776_v13 = vadd.f32 %v775_v18, %v736_v15  ;;  %v915_v18 = vadd.f32 %v914_v26, %v868_v24 }
 0x192   : > { %v810_v21 = vadd.f32 %v809_v20, %v776_v13  ;;  %v922_v40 = vpop.f32.mrf.mxu1 }
 0x193   : > { %v876_v30 = vpop.f32.mrf.mxu0 }
 0x194   : > { %v1092_v23 = vsel %vm1076_vm6, %v810_v21, 0.0 }
 0x195   : > { %1093 = vadd.xlane.f32.xlu1 %v1092_v23 }
 0x196   : > { %v817_v36 = vpop.f32.mrf.mxu3 }
 0x197   : > { %v779_v25 = vpop.f32.mrf.mxu2 }
 0x198   : > { %v780_v35 = vadd.f32 %v779_v25, %v742_v32 }
 0x19a   : > { %v814_v37 = vadd.f32 %v813_v28, %v780_v35  ;;  %v1061_v51 = vpop.f32.mrf.mxu1 }
 0x19b   : > { %v884_v38 = vpop.f32.mrf.mxu0 }
 0x19c   : > { %v1095_v46 = vsel %vm1076_vm6, %v814_v37, 0.0  ;;  %v923_v63 = vadd.f32 %v922_v40, %v884_v38 }
 0x19e   : > { %v985_v41 = vpop.f32.mrf.mxu3 }
 0x19f   : > { %v783_v33 = vpop.f32.mrf.mxu2 }
 0x1a0   : > { %v784_v55 = vadd.f32 %v783_v33, %v748_v54 }
 0x1a1   : > { %1135 = vrot.lane.b32.xlu0 %v810_v21, %s1961_s8  ;;  %v919_v21 = vadd.f32 %v918_v34, %v876_v30 }
 0x1a2   : > { %v1065_v58 = vpop.f32.mrf.mxu1  ;;  %v818_v59 = vadd.f32 %v817_v36, %v784_v55 }
 0x1a3   : > { %v1027_v48 = vpop.f32.mrf.mxu0 }
 0x1a4   : > { %v1098_v62 = vsel %vm1076_vm6, %v818_v59, 0.0 }
 0x1a6   : > { %v991_v53 = vpop.f32.mrf.mxu3 }
 0x1a7   : > { %v946_v39 = vpop.f32.mrf.mxu2 }
 0x1a8   : > { %v947_v61 = vadd.f32 %v946_v39, %v911_v57 }
 0x1aa   : > { %v986_v19 = vadd.f32 %v985_v41, %v947_v61  ;;  %v1069_v45 = vpop.f32.mrf.mxu1 }
 0x1ab   : > { %v1031_v47 = vpop.f32.mrf.mxu0 }
 0x1ac   : > { %v1028_v0 = vadd.f32 %v1027_v48, %v986_v19 }
 0x1ae   : > { %1137 = vrot.lane.b32.xlu1 %v814_v37, %s1961_s8  ;;  %v997_v60 = vpop.f32.mrf.mxu3  ;;  %v1062_v31 = vadd.f32 %v1061_v51, %v1028_v0 }
 0x1af   : > { %v951_v50 = vpop.f32.mrf.mxu2 }
 0x1b0   : > { %v1105_v9 = vsel %vm1076_vm6, %v1062_v31, 0.0  ;;  %v952_v20 = vadd.f32 %v951_v50, %v915_v18 }
 0x1b2   : > { %v1073_v16 = vpop.f32.mrf.mxu1  ;;  %v992_v22 = vadd.f32 %v991_v53, %v952_v20 }
 0x1b3   : > { %v1035_v44 = vpop.f32.mrf.mxu0 }
 0x1b4   : > { %v1032_v25 = vadd.f32 %v1031_v47, %v992_v22 }
 0x1b5   : > { %1096 = vadd.xlane.f32.xlu2 %v1095_v46 }
 0x1b6   : > { %v1003_v3 = vpop.f32.mrf.mxu3  ;;  %v1066_v28 = vadd.f32 %v1065_v58, %v1032_v25 }
 0x1b7   : > { %v956_v56 = vpop.f32.mrf.mxu2 }
 0x1b8   : > { %v957_v23 = vadd.f32 %v956_v56, %v919_v21  ;;  %v1108_v32 = vsel %vm1076_vm6, %v1066_v28, 0.0 }
 0x1ba   : > { %v998_v27 = vadd.f32 %v997_v60, %v957_v23 }
 0x1bb   : > { %v1039_v5 = vpop.f32.mrf.mxu0 }
 0x1bc   : > { %v1036_v29 = vadd.f32 %v1035_v44, %v998_v27 }
 0x1be   : > { %v1070_v33 = vadd.f32 %v1069_v45, %v1036_v29 }
 0x1bf   : > { %v961_v43 = vpop.f32.mrf.mxu2 }
 0x1c0   : > { %v962_v1 = vadd.f32 %v961_v43, %v923_v63  ;;  %v1111_v36 = vsel %vm1076_vm6, %v1070_v33, 0.0 }
 0x1c2   : > { %v1004_v4 = vadd.f32 %v1003_v3, %v962_v1 }
 0x1c4   : > { %v1079_v6 = vpop.xlane.xlu2 %1078  ;;  %v1040_v7 = vadd.f32 %v1039_v5, %v1004_v4 }
 0x1c6   : > { %v1074_v11 = vadd.f32 %v1073_v16, %v1040_v7 }
 0x1c8   : > { %v1114_v17 = vsel %vm1076_vm6, %v1074_v11, 0.0 }
 0x1cb   : > { %1099 = vadd.xlane.f32.xlu0 %v1098_v62 }
 0x1cc   : > { %v1082_v35 = vpop.xlane.xlu0 %1081 }
 0x1cd   : > { %1139 = vrot.lane.b32.xlu2 %v818_v59, %s1961_s8 }
 0x1d4   : > { %v1085_v24 = vpop.xlane.xlu1 %1084 }
 0x1d8   : > { %1106 = vadd.xlane.f32.xlu1 %v1105_v9 }
 0x1dc   : > { %v1088_v15 = vpop.xlane.xlu2 %1087 }
 0x1df   : > { %1154 = vrot.lane.b32.xlu0 %v1062_v31, %s1962_s9 }
 0x1e0   : > { %1115 = vadd.xlane.f32.xlu1 %v1114_v17 }
 0x1e6   : > { %v1134_v13 = vpop.permute.xlu2 %1133 }
 0x1e7   : > { %1146 = vst.msk [vmem:[%s2207_s7] sm:$0xff] %vm1145_vm7, %v1134_v13 }
 0x1f6   : > { %1109 = vadd.xlane.f32.xlu2 %v1108_v32 }
 0x1f9   : > { %1158 = vrot.lane.b32.xlu1 %v1070_v33, %s1962_s9 }
 0x200   : > { %v1091_v26 = vpop.xlane.xlu0 %1090 }
 0x201   : > { %v1101_v30 = vadd.f32 %v1091_v26, %v1079_v6 }
 0x208   : > { %v1094_v34 = vpop.xlane.xlu1 %1093 }
 0x209   : > { %v1102_v37 = vadd.f32 %v1094_v34, %v1082_v35  ;;  %1112 = vadd.xlane.f32.xlu0 %v1111_v36 }
 0x20e   : > { %1156 = vrot.lane.b32.xlu2 %v1066_v28, %s1962_s9 }
 0x213   : > { %v1136_v38 = vpop.permute.xlu0 %1135 }
 0x214   : > { %1147 = vst.msk [vmem:[%s2207_s7 + $0x8] sm:$0xff] %vm1145_vm7, %v1136_v38 }
 0x21d   : > { %1160 = vrot.lane.b32.xlu0 %v1074_v11, %s1962_s9 }
 0x220   : > { %v1138_v39 = vpop.permute.xlu1 %1137 }
 0x221   : > { %1148 = vst.msk [vmem:[%s2207_s7 + $0x10] sm:$0xff] %vm1145_vm7, %v1138_v39 }
 0x228   : > { %v1097_v40 = vpop.xlane.xlu2 %1096 }
 0x229   : > { %v1103_v41 = vadd.f32 %v1097_v40, %v1085_v24 }
 0x230   : > { %v1140_v46 = vpop.permute.xlu2 %1139 }
 0x231   : > { %1149 = vst.msk [vmem:[%s2207_s7 + $0x18] sm:$0xff] %vm1145_vm7, %v1140_v46 }
 0x23e   : > { %v1100_v48 = vpop.xlane.xlu0 %1099 }
 0x23f   : > { %v1104_v61 = vadd.f32 %v1100_v48, %v1088_v15 }
 0x24b   : > { %v1107_v49 = vpop.xlane.xlu1 %1106 }
 0x24c   : > { %v1117_v50 = vadd.f32 %v1107_v49, %v1101_v30 }
 0x24e   : > { %v1121_v51 = vmul.f32 0.020833334, %v1117_v50 }
 0x251   : > { %v1155_v52 = vpop.permute.xlu0 %1154 }
 0x252   : > { %1167 = vst.msk [vmem:[%s2207_s7] sm:$0xff] %vm1166_vm8, %v1155_v52 }
 0x253   : > { %1172 = vst.msk [vmem:[%s2207_s7] sm:$0xff] %vm1171_vm9, %v1121_v51  ;;  %v1116_v53 = vpop.xlane.xlu1 %1115 }
 0x254   : > { %v1120_v62 = vadd.f32 %v1116_v53, %v1104_v61 }
 0x256   : > { %v1124_v44 = vmul.f32 0.020833334, %v1120_v62 }
 0x269   : > { %v1110_v54 = vpop.xlane.xlu2 %1109 }
 0x26a   : > { %v1118_v55 = vadd.f32 %v1110_v54, %v1102_v37 }
 0x26b   : > { %v1159_v47 = vpop.permute.xlu1 %1158 }
 0x26c   : > { %1169 = vst.msk [vmem:[%s2207_s7 + $0x10] sm:$0xff] %vm1166_vm8, %v1159_v47  ;;  %v1122_v56 = vmul.f32 0.020833334, %v1118_v55 }
 0x271   : > { %v1157_v57 = vpop.permute.xlu2 %1156 }
 0x272   : > { %1168 = vst.msk [vmem:[%s2207_s7 + $0x8] sm:$0xff] %vm1166_vm8, %v1157_v57 }
 0x273   : > { %1173 = vst.msk [vmem:[%s2207_s7 + $0x8] sm:$0xff] %vm1171_vm9, %v1122_v56 }
 0x27c   : > { %v1113_v58 = vpop.xlane.xlu0 %1112 }
 0x27d   : > { %v1119_v59 = vadd.f32 %v1113_v58, %v1103_v41 }
 0x27f   : > { %v1123_v60 = vmul.f32 0.020833334, %v1119_v59 }
 0x281   : > { %1174 = vst.msk [vmem:[%s2207_s7 + $0x10] sm:$0xff] %vm1171_vm9, %v1123_v60 }
 0x28d   : > { %1179 = sbr.rel (%p1736_p8) target bundleno = 1074 (0x432), region = 36 }
 0x28f   : > { %v1161_v63 = vpop.permute.xlu0 %1160 }
 0x290   : > { %1170 = vst.msk [vmem:[%s2207_s7 + $0x18] sm:$0xff] %vm1166_vm8, %v1161_v63 }
 0x291   : > { %1175 = vst.msk [vmem:[%s2207_s7 + $0x18] sm:$0xff] %vm1171_vm9, %v1124_v44 }
 0x292   : > { %v1192_v19 = vsel %vm1076_vm6, %v2073_v42, 0.0  ;;  %vm1182_vm10 = vcmp.eq.s32.totalorder %v2017_v2, %v2026_v12  ;;  %vm1180_vm11 = vcmp.eq.s32.totalorder %v2017_v2, %v2022_v8  ;;  %v1963_v43 = vmov 0.0  }
 0x293   : > { %1193 = vadd.xlane.f32.xlu0 %v1192_v19  ;;  %v1739_v45 = vsel %vm1182_vm10, 1.0, %v1963_v43  ;;  %v1737_v0 = vsel %vm1180_vm11, 1.0, %v1963_v43  ;;  %vm1183_vm12 = vcmp.eq.s32.totalorder %v2017_v2, %v2024_v10  ;;  %vm1181_vm13 = vcmp.eq.s32.totalorder %v2017_v2, %v2038_v14 }
 0x294   : > { %v1203_v1 = vsel %vm225_vm0, %v1739_v45, 0  ;;  %v1197_v3 = vsel %vm225_vm0, %v1737_v0, 0  ;;  %v1740_v42 = vsel %vm1183_vm12, 1.0, %v1963_v43  ;;  %v1738_v6 = vsel %vm1181_vm13, 1.0, %v1963_v43 }
 0x295   : > { %v1242_v31 = vsub.f32 %v1203_v1, %v1203_v1  ;;  %v1226_v4 = vsub.f32 %v1197_v3, %v1197_v3  ;;  %v1206_v8 = vsel %vm225_vm0, %v1740_v42, 0  ;;  %v1200_v7 = vsel %vm225_vm0, %v1738_v6, 0 }
 0x296   : > { %v1250_v16 = vsub.f32 %v1206_v8, %v1206_v8  ;;  %v1234_v17 = vsub.f32 %v1200_v7, %v1200_v7 }
 0x297   : > { %v1243_v12 = vand.u32 4294901760, %v1242_v31  ;;  %v1227_v5 = vand.u32 4294901760, %v1226_v4 }
 0x298   : > { %v1251_v20 = vand.u32 4294901760, %v1250_v16  ;;  %v1235_v22 = vand.u32 4294901760, %v1234_v17 }
 0x299   : > { %v1244_v9 = vsub.f32 %v1242_v31, %v1243_v12  ;;  %v1228_v11 = vsub.f32 %v1226_v4, %v1227_v5 }
 0x29a   : > { %v1252_v14 = vsub.f32 %v1250_v16, %v1251_v20  ;;  %v1236_v25 = vsub.f32 %v1234_v17, %v1235_v22 }
 0x29b   : > { %v1245_v10 = vand.u32 4294901760, %v1244_v9  ;;  %v1229_v13 = vand.u32 4294901760, %v1228_v11 }
 0x29c   : > { %v1253_v28 = vand.u32 4294901760, %v1252_v14  ;;  %v1237_v32 = vand.u32 4294901760, %v1236_v25 }
 0x306   : > { %v1194_v15 = vpop.xlane.xlu0 %1193 }
 0x307   : > { %v1195_v18 = vmul.f32 0.0625, %v1194_v15 }
 0x309   : > { %v1223_v21 = vand.u32 4294901760, %v1195_v18 }
 0x30b   : > { %v1274_v2 = vsub.f32 %v1195_v18, %v1223_v21  ;;  %1224 = vmatpush.msra.mxu0 %v1223_v21  ;;  %1775 = vmatpush.msra.mxu2 %v1223_v21 }
 0x30c   : > { %1246 = vmatmul.f32.vlgmr.msra.gmra.mxu2 %v1245_v10  ;;  %1230 = vmatmul.f32.vlgmr.msra.gmra.mxu0 %v1229_v13 }
 0x30d   : > { %1313 = vmatpush.msrb.mxu2 %v1274_v2  ;;  %v1275_v23 = vand.u32 4294901760, %v1274_v2 }
 0x30f   : > { %1395 = vmatpush.msrb.mxu0 %v1275_v23  ;;  %v1276_v27 = vsub.f32 %v1274_v2, %v1275_v23 }
 0x311   : > { %v1277_v29 = vand.u32 4294901760, %v1276_v27 }
 0x313   : > { %1278 = vmatpush.msra.mxu1 %v1277_v29  ;;  %1776 = vmatpush.msra.mxu3 %v1277_v29 }
 0x314   : > { %1254 = vmatmul.f32.gmra.mxu2 %v1253_v28  ;;  %1743 = vmatmul.msk.f32.vlgmr.msra.gmra.mxu3 %vm225_vm0, %v1739_v45 }
 0x315   : > { %1351 = vmatpush.msrb.mxu3 %v1223_v21  ;;  %1429 = vmatpush.msrb.mxu1 %v1223_v21 }
 0x316   : > { %1741 = vmatmul.msk.f32.vlgmr.msra.gmra.mxu1 %vm225_vm0, %v1737_v0  ;;  %1238 = vmatmul.f32.gmra.mxu0 %v1237_v32 }
 0x31c   : > { %1744 = vmatmul.msk.f32.gmra.mxu3 %vm225_vm0, %v1740_v42  ;;  %1316 = vmatmul.f32.vlgmr.msrb.gmra.mxu2 %v1226_v4 }
 0x31e   : > { %1742 = vmatmul.msk.f32.gmra.mxu1 %vm225_vm0, %v1738_v6  ;;  %1745 = vmatmul.msk.f32.vlgmr.msrb.gmra.mxu0 %vm225_vm0, %v1737_v0 }
 0x324   : > { %1321 = vmatmul.f32.gmra.mxu2 %v1234_v17  ;;  %1355 = vmatmul.f32.vlgmr.msrb.gmra.mxu3 %v1227_v5 }
 0x326   : > { %1749 = vmatmul.msk.f32.vlgmr.msrb.gmra.mxu1 %vm225_vm0, %v1737_v0  ;;  %1746 = vmatmul.msk.f32.gmra.mxu0 %vm225_vm0, %v1738_v6 }
 0x32c   : > { %1326 = vmatmul.f32.gmra.mxu2 %v1242_v31  ;;  %1361 = vmatmul.f32.gmra.mxu3 %v1235_v22 }
 0x32e   : > { %1750 = vmatmul.msk.f32.gmra.mxu1 %vm225_vm0, %v1738_v6  ;;  %1747 = vmatmul.msk.f32.gmra.mxu0 %vm225_vm0, %v1739_v45 }
 0x334   : > { %1331 = vmatmul.f32.gmra.mxu2 %v1250_v16  ;;  %1367 = vmatmul.f32.gmra.mxu3 %v1243_v12 }
 0x336   : > { %1751 = vmatmul.msk.f32.gmra.mxu1 %vm225_vm0, %v1739_v45  ;;  %1748 = vmatmul.msk.f32.gmra.mxu0 %vm225_vm0, %v1740_v42 }
 0x33c   : > { %1373 = vmatmul.f32.gmra.mxu3 %v1251_v20 }
 0x33e   : > { %1752 = vmatmul.msk.f32.gmra.mxu1 %vm225_vm0, %v1740_v42  ;;  %vm1463_vm0 = vcmask 408968  }
 0x389   : > { %v1231_v33 = vpop.f32.mrf.mxu0 }
 0x38f   : > { %v1247_v35 = vpop.f32.mrf.mxu2 }
 0x393   : > { %v1281_v24 = vpop.f32.mrf.mxu1  ;;  %v1239_v26 = vpop.f32.mrf.mxu0 }
 0x394   : > { %v1282_v41 = vadd.f32 %v1281_v24, %v1231_v33 }
 0x397   : > { %v1255_v30 = vpop.f32.mrf.mxu2  ;;  %v1289_v34 = vpop.f32.mrf.mxu3 }
 0x398   : > { %v1290_v60 = vadd.f32 %v1289_v34, %v1247_v35 }
 0x39b   : > { %v1285_v36 = vpop.f32.mrf.mxu1  ;;  %v1398_v39 = vpop.f32.mrf.mxu0 }
 0x39c   : > { %v1286_v53 = vadd.f32 %v1285_v36, %v1239_v26 }
 0x39f   : > { %v1293_v37 = vpop.f32.mrf.mxu3  ;;  %v1317_v38 = vpop.f32.mrf.mxu2 }
 0x3a0   : > { %v1318_v46 = vadd.f32 %v1317_v38, %v1282_v41  ;;  %v1294_v1 = vadd.f32 %v1293_v37, %v1255_v30 }
 0x3a3   : > { %v1432_v40 = vpop.f32.mrf.mxu1  ;;  %v1402_v52 = vpop.f32.mrf.mxu0 }
 0x3a7   : > { %v1322_v48 = vpop.f32.mrf.mxu2  ;;  %v1356_v49 = vpop.f32.mrf.mxu3 }
 0x3a8   : > { %v1357_v50 = vadd.f32 %v1356_v49, %v1318_v46  ;;  %v1323_v55 = vadd.f32 %v1322_v48, %v1286_v53 }
 0x3aa   : > { %v1399_v51 = vadd.f32 %v1398_v39, %v1357_v50 }
 0x3ab   : > { %v1436_v47 = vpop.f32.mrf.mxu1  ;;  %v1406_v62 = vpop.f32.mrf.mxu0 }
 0x3ac   : > { %v1433_v54 = vadd.f32 %v1432_v40, %v1399_v51 }
 0x3ae   : > { %1451 = vrot.lane.b32.xlu0 %v1433_v54, %s1964_s10 }
 0x3af   : > { %v1362_v56 = vpop.f32.mrf.mxu3  ;;  %v1327_v58 = vpop.f32.mrf.mxu2 }
 0x3b0   : > { %v1363_v57 = vadd.f32 %v1362_v56, %v1323_v55  ;;  %v1328_v44 = vadd.f32 %v1327_v58, %v1290_v60 }
 0x3b2   : > { %v1403_v59 = vadd.f32 %v1402_v52, %v1363_v57 }
 0x3b3   : > { %v1440_v19 = vpop.f32.mrf.mxu1  ;;  %v1410_v42 = vpop.f32.mrf.mxu0 }
 0x3b4   : > { %v1437_v61 = vadd.f32 %v1436_v47, %v1403_v59 }
 0x3b6   : > { %1453 = vrot.lane.b32.xlu1 %v1437_v61, %s1964_s10 }
 0x3b7   : > { %v1368_v63 = vpop.f32.mrf.mxu3  ;;  %v1332_v0 = vpop.f32.mrf.mxu2 }
 0x3b8   : > { %v1369_v43 = vadd.f32 %v1368_v63, %v1328_v44  ;;  %v1333_v31 = vadd.f32 %v1332_v0, %v1294_v1 }
 0x3ba   : > { %v1407_v45 = vadd.f32 %v1406_v62, %v1369_v43 }
 0x3bb   : > { %v1444_v5 = vpop.f32.mrf.mxu1 }
 0x3bc   : > { %v1441_v3 = vadd.f32 %v1440_v19, %v1407_v45 }
 0x3be   : > { %1455 = vrot.lane.b32.xlu1 %v1441_v3, %s1964_s10 }
 0x3bf   : > { %v1374_v4 = vpop.f32.mrf.mxu3 }
 0x3c0   : > { %v1375_v12 = vadd.f32 %v1374_v4, %v1333_v31 }
 0x3c2   : > { %v1411_v6 = vadd.f32 %v1410_v42, %v1375_v12 }
 0x3c4   : > { %v1445_v8 = vadd.f32 %v1444_v5, %v1411_v6 }
 0x3c6   : > { %1457 = vrot.lane.b32.xlu2 %v1445_v8, %s1964_s10 }
 0x420   : > { %v1458_v7 = vpop.permute.xlu2 %1457  ;;  %v1452_v9 = vpop.permute.xlu0 %1451 }
 0x421   : > { %1467 = vst.msk [vmem:[%s2207_s7 + $0x18] sm:$0xff] %vm1463_vm0, %v1458_v7 }
 0x422   : > { %1464 = vst.msk [vmem:[%s2207_s7] sm:$0xff] %vm1463_vm0, %v1452_v9 }
 0x428   : > { %v1454_v16 = vpop.permute.xlu1 %1453 }
 0x429   : > { %1465 = vst.msk [vmem:[%s2207_s7 + $0x8] sm:$0xff] %vm1463_vm0, %v1454_v16 }
 0x430   : > { %v1456_v11 = vpop.permute.xlu1 %1455 }
 0x431   : > { %1466 = vst.msk [vmem:[%s2207_s7 + $0x10] sm:$0xff] %vm1463_vm0, %v1456_v11 }
 0x432 PF: > { %1474 = sbr.rel (!%p2010_p4) target bundleno = 1118 (0x45e), region = 40  ;;  %s1476_s11 = ssub.s32 (%p2010_p4), 7, %s2163_s24 }
 0x433   : > { %s2298_s15 = scalar_lea.vmem (%p2010_p4), %s2350_s3, %s2015_s21   ;;  %p1477_p9 = scmp.lt.s32.totalorder (%p2010_p4), %s1476_s11, 4 }
 0x437   : > { %s2367_s11 = smov (!%p1477_p9, %s1476_s11), 4 }
 0x438   : > { %s1755_s17 = sshll.u32 %s2367_s11, 3 }
 0x439   : > { %p1758_p10 = scmp.eq.s32.totalorder %s1755_s17, 0 }
 0x43a   : > { %s2304_s18 = sshrl.u32 (!%p1758_p10), %s2367_s11, 2 }
 0x43b   : > { %1485 = sbr.rel (%p1758_p10) target bundleno = 1118 (0x45e), region = 44  ;;  %p1759_p11 = scmp.le.s32.totalorder (!%p1758_p10), %s2304_s18, 0 }
 0x440   : > { %1652 = sbr.rel (%p1759_p11) target bundleno = 1101 (0x44d), region = 120  ;;  %s2360_s20 = smov (!%p1759_p11), %s2298_s15 }
 0x441   : > { %s2361_s21 = smov (!%p1759_p11), %s2207_s7  ;;  %s2313_s22 = smov (!%p1759_p11), 0  }
 0x442   : > { %s1939_s23 = smov (!%p1759_p11), 0  }
 0x445 LB: >> { %v1554_v15 = vld [vmem:[%s1933_s21] sm:$0xff]  ;;  %v1556_v17 = vld [vmem:[%s1933_s21 + $0x8] sm:$0xff]  ;;  %v1558_v18 = vld [vmem:[%s1933_s21 + $0x10] sm:$0xff]  ;;  %s1562_s24 = sadd.s32 1, %s1937_s22  ;;  %s1548_s23 = sadd.s32 1, %s1941_s23   ;;  %s1941_s23 = sphi %s1939_s23, %s1548_s23   ;;  %s1937_s22 = sphi %s2313_s22, %s2362_s22   ;;  %s1933_s21 = sphi %s2361_s21, %s1567_s21   ;;  %s1929_s20 = sphi %s2360_s20, %s1568_s20  }
 0x446   : >> { %1555 = vst [vmem:[%s1929_s20] sm:$0xff] %v1554_v15  ;;  %v1560_v10 = vld [vmem:[%s1933_s21 + $0x18] sm:$0xff]  ;;  %p1563_p12 = scmp.ge.s32.totalorder %s1562_s24, %s2304_s18  ;;  %p1547_p13 = scmp.ge.s32.totalorder %s1548_s23, %s2304_s18 }
 0x447   : >> { %1557 = vst [vmem:[%s1929_s20 + $0x8] sm:$0xff] %v1556_v17 }
 0x448   : >> { %1559 = vst [vmem:[%s1929_s20 + $0x10] sm:$0xff] %v1558_v18  ;;  %s2369_s24 = smov (%p1563_p12, %s1562_s24), 0  ;;  %1550 = sbr.rel (!%p1547_p13) target bundleno = 1093 (0x445), region = 126 }
 0x449   : >> { %1561 = vst [vmem:[%s1929_s20 + $0x18] sm:$0xff] %v1560_v10  ;;  %s1760_s25 = sshll.u32 %s2369_s24, 5  ;;  %s2362_s22 = smov %s2369_s24 }
 0x44a   : >> { %s1567_s21 = scalar_lea.vmem %s2207_s7, %s1760_s25 [#allocation2]   ;;  %s1568_s20 = scalar_lea.vmem %s2298_s15, %s1760_s25  }
 0x44d PF: > { %s2329_s26 = sand.u32 3, %s2367_s11   ;;  %s1771_s27 = sshll.u32 %s2304_s18, 5 }
 0x44e   : > { %s1573_s28 = scalar_lea.vmem %s2207_s7, %s1771_s27 [#allocation2]   ;;  %s1575_s29 = scalar_lea.vmem %s2298_s15, %s1771_s27  }
 0x44f   : > { %p1765_p0 = scmp.le.s32.totalorder %s2329_s26, 0 }
 0x450   : > { %s1943_s30 = smov (!%p1765_p0), %s1575_s29   ;;  %s1947_s4 = smov (!%p1765_p0), %s1573_s28  }
 0x451   : > { %1666 = sbr.rel (%p1765_p0) target bundleno = 1118 (0x45e), region = 131  ;;  %s1951_s5 = smov (!%p1765_p0), 0  }
 0x452   : > { %s1955_s6 = smov (!%p1765_p0), 0  }
 0x456 LB: >> { %v1585_v20 = vld [vmem:[%s1949_s4] sm:$0xff]  ;;  %s1587_s8 = sadd.s32 1, %s1953_s5  ;;  %s1579_s6 = sadd.s32 1, %s1957_s6   ;;  %s1957_s6 = sphi %s1955_s6, %s1579_s6   ;;  %s1953_s5 = sphi %s1951_s5, %s1952_s5   ;;  %s1949_s4 = sphi %s1947_s4, %s1592_s4   ;;  %s1945_s30 = sphi %s1943_s30, %s1593_s30  }
 0x457   : >> { %1586 = vst [vmem:[%s1945_s30] sm:$0xff] %v1585_v20  ;;  %p1588_p1 = scmp.ge.s32.totalorder %s1587_s8, %s2329_s26  ;;  %p1578_p2 = scmp.ge.s32.totalorder %s1579_s6, %s2329_s26 }
 0x459   : >> { %s2371_s8 = smov (%p1588_p1, %s1587_s8), 0  ;;  %1581 = sbr.rel (!%p1578_p2) target bundleno = 1110 (0x456), region = 137 }
 0x45a   : >> { %s1766_s7 = sshll.u32 %s2371_s8, 3  ;;  %s1952_s5 = smov %s2371_s8  }
 0x45b   : >> { %s1592_s4 = scalar_lea.vmem %s1573_s28, %s1766_s7 [#allocation2]   ;;  %s1593_s30 = scalar_lea.vmem %s1575_s29, %s1766_s7  }
 0x45e PF: > { %p10_p3 = scmp.ge.s32.totalorder %s2000_s16, 4   ;;  %s2363_s12 = smov %s1921_s13 }
 0x45f   : > { %s2364_s13 = smov %s2008_s19  ;;  %s2365_s14 = smov %s2000_s16 }
 0x460   :  { %12 = sbr.rel (!%p10_p3) target bundleno = 2 (0x2), region = 148 }

</bundles_post_ra>
